<compile_context>
chip_gen: v5e
topology: v5e:2x2
jax: 0.10.0
libtpu: 0.0.40
codegen_flags: <defaults>
</compile_context>

<pallas_src>
import math
import numpy as np
import jax
import jax.numpy as jnp
from jax import lax
from jax.experimental import pallas as pl
from jax.experimental.pallas import tpu as pltpu

# ---- small, module-consistent config (original: out_channels=80, K=251) ----
IN_CHANNELS = 1
OUT_CHANNELS = 8
KERNEL_SIZE = 15            # odd, like 251 in the original
SAMPLE_RATE = 16000
MIN_FREQ = 50.0
MIN_BAND = 50.0

BATCH = 2
SEQ_LEN = 64
PAD = (KERNEL_SIZE - 1) // 2
TOTAL = BATCH * SEQ_LEN     # 128 lanes == exactly one full vreg width

# Static invariants of the lane-folded batch layout / seam masking.
assert KERNEL_SIZE % 2 == 1
assert PAD < SEQ_LEN, "conv halo must fit inside one batch segment"
assert TOTAL == BATCH * SEQ_LEN
assert TOTAL % 128 == 0, "lane-dense output tile requires a multiple of 128 lanes"


# ----------------------- deterministic parameter init -----------------------
def _get_mel_points(fs, n_filt, fmin=80):
    high_freq_mel = 2595 * np.log10(1 + fs / 2 / 700)
    mel_points = np.linspace(fmin, high_freq_mel, n_filt)
    f_cos = 700 * (10 ** (mel_points / 2595) - 1)
    return f_cos


def _get_bands(f_cos, fs):
    b1 = np.roll(f_cos, 1)
    b2 = np.roll(f_cos, -1)
    b1[0] = 30
    b2[-1] = fs / 2 - 100
    return b1, b2


def init_params():
    f_cos = _get_mel_points(SAMPLE_RATE, OUT_CHANNELS)
    b1, b2 = _get_bands(f_cos, SAMPLE_RATE)
    filt_b1 = (b1 / SAMPLE_RATE).astype(np.float32)            # (C,)
    filt_band = ((b2 - b1) / SAMPLE_RATE).astype(np.float32)   # (C,)
    hamming = np.hamming(KERNEL_SIZE).astype(np.float32)       # (K,)
    # Full symmetric time axis in seconds; center tap is exactly 0.  Because
    # sinc is even, this reproduces torch's [flip(y_right), 1, y_right] exactly.
    t_full = ((np.arange(KERNEL_SIZE) - PAD) / SAMPLE_RATE).astype(np.float32)
    return filt_b1, filt_band, hamming, t_full


# --------------------------------- kernel -----------------------------------
def sinc_conv_kernel(xf_ref, p_ref, tk_ref, o_ref):
    # xf_ref: (1, TOTAL)  batch-major flattened signal (lane = b*SEQ_LEN + pos)
    # p_ref:  (C, 2)      col 0 = filt_b1, col 1 = filt_band   (learnable)
    # tk_ref: (2, K)      row 0 = t (seconds), row 1 = hamming (constants)
    # o_ref:  (C, TOTAL)  lane-dense output
    sr = jnp.float32(SAMPLE_RATE)
    two_pi = jnp.float32(2.0 * math.pi)

    # ---- filter synthesis: runs once per invocation, outside the tap loop ---
    b1 = p_ref[:, 0:1]                                       # (C, 1)
    bw = p_ref[:, 1:2]                                       # (C, 1)
    t = tk_ref[0:1, :]                                       # (1, K)
    ham = tk_ref[1:2, :]                                     # (1, K)

    beg = jnp.abs(b1) + MIN_FREQ / sr                        # (C, 1)
    end = beg + (jnp.abs(bw) + MIN_BAND / sr)                # (C, 1)

    def low_pass(f):                                         # f: (C, 1)
        arg = two_pi * (f * sr) * t                          # (C, K)
        # 0/0 guard at the exact-zero center tap; keep tied to this divide.
        # (t is built as (k - PAD)/sr with integer k, so the center is an
        # exact float zero.)
        sinc = jnp.where(t == 0.0, jnp.float32(1.0), jnp.sin(arg) / arg)
        return 2.0 * f * sinc

    band_pass = low_pass(end) - low_pass(beg)                # (C, K)
    # NOTE: the reference also computes c = band_pass / max(band_pass, dim=1)
    # but never uses it (dead code), so it is intentionally omitted here.
    filters = band_pass * ham                                # (C, K)

    # ---- conv as shift-and-accumulate (rolls on XLU, FMAs on VPU) ----------
    # Hoist the sublane broadcast out of the tap loop: everything below works
    # on the full (C, TOTAL) = (8, 128) vreg tile.
    xf8 = jnp.broadcast_to(xf_ref[...], (OUT_CHANNELS, TOTAL))
    lane = lax.broadcasted_iota(jnp.int32, (OUT_CHANNELS, TOTAL), 1)
    if SEQ_LEN & (SEQ_LEN - 1) == 0:
        pos = lane & (SEQ_LEN - 1)                           # lane mod SEQ_LEN
    else:
        pos = lane % SEQ_LEN

    # Peel the center tap (s == 0): it initializes the accumulator directly.
    acc = filters[:, PAD:PAD + 1] * xf8                      # (C,1)*(C,T)->(C,T)

    for k in range(KERNEL_SIZE):                             # static unroll (K-1 taps)
        s = k - PAD                                          # signal shift for tap k
        if s == 0:
            continue
        # rolled[j] = xf8[(j + s) mod TOTAL]; mask off positions whose source
        # falls outside this batch segment (implicit zero padding at the seam).
        rolled = pltpu.roll(xf8, shift=(-s) % TOTAL, axis=1)
        if s > 0:
            shifted = jnp.where(pos < (SEQ_LEN - s), rolled, 0.0)
        else:
            shifted = jnp.where(pos >= (-s), rolled, 0.0)
        acc = acc + filters[:, k:k + 1] * shifted

    o_ref[...] = acc                                         # full unmasked vst


# -------------------------------- wrapper ------------------------------------
def sinc_conv(x, filt_b1, filt_band, hamming, t_full):
    # x: (BATCH, 1, SEQ_LEN)  (torch NCL, in_channels = 1)
    n, cin, L = x.shape
    assert (n, cin, L) == (BATCH, IN_CHANNELS, SEQ_LEN)

    # Free layout plumbing: fold batch into the lane axis, pack the small
    # parameter/constant vectors into two arrays (3 DMAs total).
    xf = x[:, 0, :].reshape(1, TOTAL)                        # (1, B*S) lane-dense
    params = jnp.stack([filt_b1, filt_band], axis=1)         # (C, 2)
    tk = jnp.stack([t_full, hamming], axis=0)                # (2, K)

    out_flat = pl.pallas_call(
        sinc_conv_kernel,
        out_shape=jax.ShapeDtypeStruct((OUT_CHANNELS, TOTAL), jnp.float32),
        grid=(1,),
        in_specs=[
            pl.BlockSpec((1, TOTAL), lambda i: (0, 0)),
            pl.BlockSpec((OUT_CHANNELS, 2), lambda i: (0, 0)),
            pl.BlockSpec((2, KERNEL_SIZE), lambda i: (0, 0)),
        ],
        out_specs=pl.BlockSpec((OUT_CHANNELS, TOTAL), lambda i: (0, 0)),
        compiler_params=pltpu.CompilerParams(
            dimension_semantics=("parallel",)),
    )(xf, params, tk)

    # Free layout plumbing back to torch-style NCL output (B, C_out, S).
    return out_flat.reshape(OUT_CHANNELS, BATCH, SEQ_LEN).transpose(1, 0, 2)


# ------------------------------ JAX reference --------------------------------
def sinc_conv_reference(x, filt_b1, filt_band, hamming, t_full):
    beg = jnp.abs(filt_b1) + MIN_FREQ / SAMPLE_RATE
    end = beg + (jnp.abs(filt_band) + MIN_BAND / SAMPLE_RATE)

    def lp(f):
        arg = 2.0 * math.pi * (f[:, None] * SAMPLE_RATE) * t_full[None, :]
        s = jnp.where(t_full[None, :] == 0.0, 1.0, jnp.sin(arg) / arg)
        return 2.0 * f[:, None] * s

    filters = (lp(end) - lp(beg)) * hamming[None, :]
    return jax.lax.conv_general_dilated(
        x, filters[:, None, :], window_strides=(1,), padding=[(PAD, PAD)],
        dimension_numbers=("NCH", "OIH", "NCH"))


# ---------------------------------- main --------------------------------------
if __name__ == "__main__":
    key = jax.random.PRNGKey(0)
    x = jax.random.normal(key, (BATCH, IN_CHANNELS, SEQ_LEN), dtype=jnp.float32)
    filt_b1, filt_band, hamming, t_full = map(jnp.asarray, init_params())

    out = sinc_conv(x, filt_b1, filt_band, hamming, t_full)
    out = jax.block_until_ready(out)

    ref = sinc_conv_reference(x, filt_b1, filt_band, hamming, t_full)
    assert out.shape == (BATCH, OUT_CHANNELS, SEQ_LEN)
    np.testing.assert_allclose(np.asarray(out), np.asarray(ref),
                               rtol=1e-4, atol=1e-4)
    print("KERNEL_OK")
</pallas_src>

<mosaic_0001>
module attributes {stable_mosaic.version = 11 : i64} {
  func.func @sinc_conv_kernel(%arg0: i32, %arg1: memref<1x128xf32, #tpu.memory_space<vmem>>, %arg2: memref<8x2xf32, #tpu.memory_space<vmem>>, %arg3: memref<2x15xf32, #tpu.memory_space<vmem>>, %arg4: memref<8x128xf32, #tpu.memory_space<vmem>>) attributes {dimension_semantics = [#tpu.dimension_semantics<parallel>], iteration_bounds = array<i64: 1>, scalar_prefetch = 0 : i64, scratch_operands = 0 : i64, tpu.core_type = #tpu.core_type<tc>, window_params = [{pipeline_mode = #tpu.pipeline_mode<synchronous>, transform_indices = @transform_0, window_bounds = array<i64: 1, 128>}, {pipeline_mode = #tpu.pipeline_mode<synchronous>, transform_indices = @transform_1, window_bounds = array<i64: 8, 2>}, {pipeline_mode = #tpu.pipeline_mode<synchronous>, transform_indices = @transform_2, window_bounds = array<i64: 2, 15>}, {pipeline_mode = #tpu.pipeline_mode<synchronous>, transform_indices = @transform_3, window_bounds = array<i64: 8, 128>}]} {
    %c0 = arith.constant 0 : index
    %c0_0 = arith.constant 0 : index
    %0 = vector.load %arg2[%c0, %c0_0] : memref<8x2xf32, #tpu.memory_space<vmem>>, vector<8x1xf32>
    %c0_1 = arith.constant 0 : index
    %c1 = arith.constant 1 : index
    %1 = vector.load %arg2[%c0_1, %c1] : memref<8x2xf32, #tpu.memory_space<vmem>>, vector<8x1xf32>
    %c0_2 = arith.constant 0 : index
    %c0_3 = arith.constant 0 : index
    %2 = vector.load %arg3[%c0_2, %c0_3] : memref<2x15xf32, #tpu.memory_space<vmem>>, vector<1x15xf32>
    %c1_4 = arith.constant 1 : index
    %c0_5 = arith.constant 0 : index
    %3 = vector.load %arg3[%c1_4, %c0_5] : memref<2x15xf32, #tpu.memory_space<vmem>>, vector<1x15xf32>
    %4 = math.absf %0 : vector<8x1xf32>
    %cst = arith.constant 5.000000e+01 : f32
    %cst_6 = arith.constant 1.600000e+04 : f32
    %5 = arith.divf %cst, %cst_6 : f32
    %6 = vector.broadcast %5 : f32 to vector<8x1xf32>
    %7 = arith.addf %4, %6 : vector<8x1xf32>
    %8 = math.absf %1 : vector<8x1xf32>
    %cst_7 = arith.constant 5.000000e+01 : f32
    %cst_8 = arith.constant 1.600000e+04 : f32
    %9 = arith.divf %cst_7, %cst_8 : f32
    %10 = vector.broadcast %9 : f32 to vector<8x1xf32>
    %11 = arith.addf %8, %10 : vector<8x1xf32>
    %12 = arith.addf %7, %11 : vector<8x1xf32>
    %cst_9 = arith.constant 1.600000e+04 : f32
    %13 = vector.broadcast %cst_9 : f32 to vector<8x1xf32>
    %14 = arith.mulf %12, %13 : vector<8x1xf32>
    %cst_10 = arith.constant 6.28318548 : f32
    %15 = vector.broadcast %cst_10 : f32 to vector<8x1xf32>
    %16 = arith.mulf %15, %14 : vector<8x1xf32>
    %17 = vector.broadcast %16 : vector<8x1xf32> to vector<8x15xf32>
    %18 = vector.broadcast %2 : vector<1x15xf32> to vector<8x15xf32>
    %19 = arith.mulf %17, %18 : vector<8x15xf32>
    %cst_11 = arith.constant 0.000000e+00 : f32
    %20 = vector.broadcast %cst_11 : f32 to vector<1x15xf32>
    %21 = arith.cmpf oeq, %2, %20 : vector<1x15xf32>
    %22 = math.sin %19 : vector<8x15xf32>
    %23 = arith.divf %22, %19 : vector<8x15xf32>
    %cst_12 = arith.constant 1.000000e+00 : f32
    %24 = vector.shape_cast %21 : vector<1x15xi1> to vector<1x15xi1>
    %25 = vector.broadcast %24 : vector<1x15xi1> to vector<8x15xi1>
    %26 = vector.broadcast %cst_12 : f32 to vector<8x15xf32>
    %27 = arith.select %25, %26, %23 : vector<8x15xi1>, vector<8x15xf32>
    %cst_13 = arith.constant 2.000000e+00 : f32
    %28 = vector.broadcast %cst_13 : f32 to vector<8x1xf32>
    %29 = arith.mulf %28, %12 : vector<8x1xf32>
    %30 = vector.broadcast %29 : vector<8x1xf32> to vector<8x15xf32>
    %31 = arith.mulf %30, %27 : vector<8x15xf32>
    %cst_14 = arith.constant 1.600000e+04 : f32
    %32 = vector.broadcast %cst_14 : f32 to vector<8x1xf32>
    %33 = arith.mulf %7, %32 : vector<8x1xf32>
    %cst_15 = arith.constant 6.28318548 : f32
    %34 = vector.broadcast %cst_15 : f32 to vector<8x1xf32>
    %35 = arith.mulf %34, %33 : vector<8x1xf32>
    %36 = vector.broadcast %35 : vector<8x1xf32> to vector<8x15xf32>
    %37 = vector.broadcast %2 : vector<1x15xf32> to vector<8x15xf32>
    %38 = arith.mulf %36, %37 : vector<8x15xf32>
    %cst_16 = arith.constant 0.000000e+00 : f32
    %39 = vector.broadcast %cst_16 : f32 to vector<1x15xf32>
    %40 = arith.cmpf oeq, %2, %39 : vector<1x15xf32>
    %41 = math.sin %38 : vector<8x15xf32>
    %42 = arith.divf %41, %38 : vector<8x15xf32>
    %cst_17 = arith.constant 1.000000e+00 : f32
    %43 = vector.shape_cast %40 : vector<1x15xi1> to vector<1x15xi1>
    %44 = vector.broadcast %43 : vector<1x15xi1> to vector<8x15xi1>
    %45 = vector.broadcast %cst_17 : f32 to vector<8x15xf32>
    %46 = arith.select %44, %45, %42 : vector<8x15xi1>, vector<8x15xf32>
    %cst_18 = arith.constant 2.000000e+00 : f32
    %47 = vector.broadcast %cst_18 : f32 to vector<8x1xf32>
    %48 = arith.mulf %47, %7 : vector<8x1xf32>
    %49 = vector.broadcast %48 : vector<8x1xf32> to vector<8x15xf32>
    %50 = arith.mulf %49, %46 : vector<8x15xf32>
    %51 = arith.subf %31, %50 : vector<8x15xf32>
    %52 = vector.broadcast %3 : vector<1x15xf32> to vector<8x15xf32>
    %53 = arith.mulf %51, %52 : vector<8x15xf32>
    %c0_19 = arith.constant 0 : index
    %c0_20 = arith.constant 0 : index
    %54 = vector.load %arg1[%c0_19, %c0_20] : memref<1x128xf32, #tpu.memory_space<vmem>>, vector<1x128xf32>
    %55 = vector.shape_cast %54 : vector<1x128xf32> to vector<1x128xf32>
    %56 = vector.broadcast %55 : vector<1x128xf32> to vector<8x128xf32>
    %57 = tpu.iota {dimensions = array<i32: 1>} : vector<8x128xi32>
    %c63_i32 = arith.constant 63 : i32
    %58 = vector.broadcast %c63_i32 : i32 to vector<8x128xi32>
    %59 = arith.andi %57, %58 : vector<8x128xi32>
    %60 = vector.extract_strided_slice %53 {offsets = [0, 7], sizes = [8, 1], strides = [1, 1]} : vector<8x15xf32> to vector<8x1xf32>
    %61 = vector.broadcast %60 : vector<8x1xf32> to vector<8x128xf32>
    %62 = arith.mulf %61, %56 : vector<8x128xf32>
    %c7_i32 = arith.constant 7 : i32
    %63 = tpu.dynamic_rotate %56 by %c7_i32 dim 1 : vector<8x128xf32>, i32 -> vector<8x128xf32>
    %c7_i32_21 = arith.constant 7 : i32
    %64 = vector.broadcast %c7_i32_21 : i32 to vector<8x128xi32>
    %65 = arith.cmpi sge, %59, %64 : vector<8x128xi32>
    %cst_22 = arith.constant 0.000000e+00 : f32
    %66 = vector.broadcast %cst_22 : f32 to vector<8x128xf32>
    %67 = arith.select %65, %63, %66 : vector<8x128xi1>, vector<8x128xf32>
    %68 = vector.extract_strided_slice %53 {offsets = [0, 0], sizes = [8, 1], strides = [1, 1]} : vector<8x15xf32> to vector<8x1xf32>
    %69 = vector.broadcast %68 : vector<8x1xf32> to vector<8x128xf32>
    %70 = arith.mulf %69, %67 : vector<8x128xf32>
    %71 = arith.addf %62, %70 : vector<8x128xf32>
    %c6_i32 = arith.constant 6 : i32
    %72 = tpu.dynamic_rotate %56 by %c6_i32 dim 1 : vector<8x128xf32>, i32 -> vector<8x128xf32>
    %c6_i32_23 = arith.constant 6 : i32
    %73 = vector.broadcast %c6_i32_23 : i32 to vector<8x128xi32>
    %74 = arith.cmpi sge, %59, %73 : vector<8x128xi32>
    %cst_24 = arith.constant 0.000000e+00 : f32
    %75 = vector.broadcast %cst_24 : f32 to vector<8x128xf32>
    %76 = arith.select %74, %72, %75 : vector<8x128xi1>, vector<8x128xf32>
    %77 = vector.extract_strided_slice %53 {offsets = [0, 1], sizes = [8, 1], strides = [1, 1]} : vector<8x15xf32> to vector<8x1xf32>
    %78 = vector.broadcast %77 : vector<8x1xf32> to vector<8x128xf32>
    %79 = arith.mulf %78, %76 : vector<8x128xf32>
    %80 = arith.addf %71, %79 : vector<8x128xf32>
    %c5_i32 = arith.constant 5 : i32
    %81 = tpu.dynamic_rotate %56 by %c5_i32 dim 1 : vector<8x128xf32>, i32 -> vector<8x128xf32>
    %c5_i32_25 = arith.constant 5 : i32
    %82 = vector.broadcast %c5_i32_25 : i32 to vector<8x128xi32>
    %83 = arith.cmpi sge, %59, %82 : vector<8x128xi32>
    %cst_26 = arith.constant 0.000000e+00 : f32
    %84 = vector.broadcast %cst_26 : f32 to vector<8x128xf32>
    %85 = arith.select %83, %81, %84 : vector<8x128xi1>, vector<8x128xf32>
    %86 = vector.extract_strided_slice %53 {offsets = [0, 2], sizes = [8, 1], strides = [1, 1]} : vector<8x15xf32> to vector<8x1xf32>
    %87 = vector.broadcast %86 : vector<8x1xf32> to vector<8x128xf32>
    %88 = arith.mulf %87, %85 : vector<8x128xf32>
    %89 = arith.addf %80, %88 : vector<8x128xf32>
    %c4_i32 = arith.constant 4 : i32
    %90 = tpu.dynamic_rotate %56 by %c4_i32 dim 1 : vector<8x128xf32>, i32 -> vector<8x128xf32>
    %c4_i32_27 = arith.constant 4 : i32
    %91 = vector.broadcast %c4_i32_27 : i32 to vector<8x128xi32>
    %92 = arith.cmpi sge, %59, %91 : vector<8x128xi32>
    %cst_28 = arith.constant 0.000000e+00 : f32
    %93 = vector.broadcast %cst_28 : f32 to vector<8x128xf32>
    %94 = arith.select %92, %90, %93 : vector<8x128xi1>, vector<8x128xf32>
    %95 = vector.extract_strided_slice %53 {offsets = [0, 3], sizes = [8, 1], strides = [1, 1]} : vector<8x15xf32> to vector<8x1xf32>
    %96 = vector.broadcast %95 : vector<8x1xf32> to vector<8x128xf32>
    %97 = arith.mulf %96, %94 : vector<8x128xf32>
    %98 = arith.addf %89, %97 : vector<8x128xf32>
    %c3_i32 = arith.constant 3 : i32
    %99 = tpu.dynamic_rotate %56 by %c3_i32 dim 1 : vector<8x128xf32>, i32 -> vector<8x128xf32>
    %c3_i32_29 = arith.constant 3 : i32
    %100 = vector.broadcast %c3_i32_29 : i32 to vector<8x128xi32>
    %101 = arith.cmpi sge, %59, %100 : vector<8x128xi32>
    %cst_30 = arith.constant 0.000000e+00 : f32
    %102 = vector.broadcast %cst_30 : f32 to vector<8x128xf32>
    %103 = arith.select %101, %99, %102 : vector<8x128xi1>, vector<8x128xf32>
    %104 = vector.extract_strided_slice %53 {offsets = [0, 4], sizes = [8, 1], strides = [1, 1]} : vector<8x15xf32> to vector<8x1xf32>
    %105 = vector.broadcast %104 : vector<8x1xf32> to vector<8x128xf32>
    %106 = arith.mulf %105, %103 : vector<8x128xf32>
    %107 = arith.addf %98, %106 : vector<8x128xf32>
    %c2_i32 = arith.constant 2 : i32
    %108 = tpu.dynamic_rotate %56 by %c2_i32 dim 1 : vector<8x128xf32>, i32 -> vector<8x128xf32>
    %c2_i32_31 = arith.constant 2 : i32
    %109 = vector.broadcast %c2_i32_31 : i32 to vector<8x128xi32>
    %110 = arith.cmpi sge, %59, %109 : vector<8x128xi32>
    %cst_32 = arith.constant 0.000000e+00 : f32
    %111 = vector.broadcast %cst_32 : f32 to vector<8x128xf32>
    %112 = arith.select %110, %108, %111 : vector<8x128xi1>, vector<8x128xf32>
    %113 = vector.extract_strided_slice %53 {offsets = [0, 5], sizes = [8, 1], strides = [1, 1]} : vector<8x15xf32> to vector<8x1xf32>
    %114 = vector.broadcast %113 : vector<8x1xf32> to vector<8x128xf32>
    %115 = arith.mulf %114, %112 : vector<8x128xf32>
    %116 = arith.addf %107, %115 : vector<8x128xf32>
    %c1_i32 = arith.constant 1 : i32
    %117 = tpu.dynamic_rotate %56 by %c1_i32 dim 1 : vector<8x128xf32>, i32 -> vector<8x128xf32>
    %c1_i32_33 = arith.constant 1 : i32
    %118 = vector.broadcast %c1_i32_33 : i32 to vector<8x128xi32>
    %119 = arith.cmpi sge, %59, %118 : vector<8x128xi32>
    %cst_34 = arith.constant 0.000000e+00 : f32
    %120 = vector.broadcast %cst_34 : f32 to vector<8x128xf32>
    %121 = arith.select %119, %117, %120 : vector<8x128xi1>, vector<8x128xf32>
    %122 = vector.extract_strided_slice %53 {offsets = [0, 6], sizes = [8, 1], strides = [1, 1]} : vector<8x15xf32> to vector<8x1xf32>
    %123 = vector.broadcast %122 : vector<8x1xf32> to vector<8x128xf32>
    %124 = arith.mulf %123, %121 : vector<8x128xf32>
    %125 = arith.addf %116, %124 : vector<8x128xf32>
    %c127_i32 = arith.constant 127 : i32
    %126 = tpu.dynamic_rotate %56 by %c127_i32 dim 1 : vector<8x128xf32>, i32 -> vector<8x128xf32>
    %c63_i32_35 = arith.constant 63 : i32
    %127 = vector.broadcast %c63_i32_35 : i32 to vector<8x128xi32>
    %128 = arith.cmpi slt, %59, %127 : vector<8x128xi32>
    %cst_36 = arith.constant 0.000000e+00 : f32
    %129 = vector.broadcast %cst_36 : f32 to vector<8x128xf32>
    %130 = arith.select %128, %126, %129 : vector<8x128xi1>, vector<8x128xf32>
    %131 = vector.extract_strided_slice %53 {offsets = [0, 8], sizes = [8, 1], strides = [1, 1]} : vector<8x15xf32> to vector<8x1xf32>
    %132 = vector.broadcast %131 : vector<8x1xf32> to vector<8x128xf32>
    %133 = arith.mulf %132, %130 : vector<8x128xf32>
    %134 = arith.addf %125, %133 : vector<8x128xf32>
    %c126_i32 = arith.constant 126 : i32
    %135 = tpu.dynamic_rotate %56 by %c126_i32 dim 1 : vector<8x128xf32>, i32 -> vector<8x128xf32>
    %c62_i32 = arith.constant 62 : i32
    %136 = vector.broadcast %c62_i32 : i32 to vector<8x128xi32>
    %137 = arith.cmpi slt, %59, %136 : vector<8x128xi32>
    %cst_37 = arith.constant 0.000000e+00 : f32
    %138 = vector.broadcast %cst_37 : f32 to vector<8x128xf32>
    %139 = arith.select %137, %135, %138 : vector<8x128xi1>, vector<8x128xf32>
    %140 = vector.extract_strided_slice %53 {offsets = [0, 9], sizes = [8, 1], strides = [1, 1]} : vector<8x15xf32> to vector<8x1xf32>
    %141 = vector.broadcast %140 : vector<8x1xf32> to vector<8x128xf32>
    %142 = arith.mulf %141, %139 : vector<8x128xf32>
    %143 = arith.addf %134, %142 : vector<8x128xf32>
    %c125_i32 = arith.constant 125 : i32
    %144 = tpu.dynamic_rotate %56 by %c125_i32 dim 1 : vector<8x128xf32>, i32 -> vector<8x128xf32>
    %c61_i32 = arith.constant 61 : i32
    %145 = vector.broadcast %c61_i32 : i32 to vector<8x128xi32>
    %146 = arith.cmpi slt, %59, %145 : vector<8x128xi32>
    %cst_38 = arith.constant 0.000000e+00 : f32
    %147 = vector.broadcast %cst_38 : f32 to vector<8x128xf32>
    %148 = arith.select %146, %144, %147 : vector<8x128xi1>, vector<8x128xf32>
    %149 = vector.extract_strided_slice %53 {offsets = [0, 10], sizes = [8, 1], strides = [1, 1]} : vector<8x15xf32> to vector<8x1xf32>
    %150 = vector.broadcast %149 : vector<8x1xf32> to vector<8x128xf32>
    %151 = arith.mulf %150, %148 : vector<8x128xf32>
    %152 = arith.addf %143, %151 : vector<8x128xf32>
    %c124_i32 = arith.constant 124 : i32
    %153 = tpu.dynamic_rotate %56 by %c124_i32 dim 1 : vector<8x128xf32>, i32 -> vector<8x128xf32>
    %c60_i32 = arith.constant 60 : i32
    %154 = vector.broadcast %c60_i32 : i32 to vector<8x128xi32>
    %155 = arith.cmpi slt, %59, %154 : vector<8x128xi32>
    %cst_39 = arith.constant 0.000000e+00 : f32
    %156 = vector.broadcast %cst_39 : f32 to vector<8x128xf32>
    %157 = arith.select %155, %153, %156 : vector<8x128xi1>, vector<8x128xf32>
    %158 = vector.extract_strided_slice %53 {offsets = [0, 11], sizes = [8, 1], strides = [1, 1]} : vector<8x15xf32> to vector<8x1xf32>
    %159 = vector.broadcast %158 : vector<8x1xf32> to vector<8x128xf32>
    %160 = arith.mulf %159, %157 : vector<8x128xf32>
    %161 = arith.addf %152, %160 : vector<8x128xf32>
    %c123_i32 = arith.constant 123 : i32
    %162 = tpu.dynamic_rotate %56 by %c123_i32 dim 1 : vector<8x128xf32>, i32 -> vector<8x128xf32>
    %c59_i32 = arith.constant 59 : i32
    %163 = vector.broadcast %c59_i32 : i32 to vector<8x128xi32>
    %164 = arith.cmpi slt, %59, %163 : vector<8x128xi32>
    %cst_40 = arith.constant 0.000000e+00 : f32
    %165 = vector.broadcast %cst_40 : f32 to vector<8x128xf32>
    %166 = arith.select %164, %162, %165 : vector<8x128xi1>, vector<8x128xf32>
    %167 = vector.extract_strided_slice %53 {offsets = [0, 12], sizes = [8, 1], strides = [1, 1]} : vector<8x15xf32> to vector<8x1xf32>
    %168 = vector.broadcast %167 : vector<8x1xf32> to vector<8x128xf32>
    %169 = arith.mulf %168, %166 : vector<8x128xf32>
    %170 = arith.addf %161, %169 : vector<8x128xf32>
    %c122_i32 = arith.constant 122 : i32
    %171 = tpu.dynamic_rotate %56 by %c122_i32 dim 1 : vector<8x128xf32>, i32 -> vector<8x128xf32>
    %c58_i32 = arith.constant 58 : i32
    %172 = vector.broadcast %c58_i32 : i32 to vector<8x128xi32>
    %173 = arith.cmpi slt, %59, %172 : vector<8x128xi32>
    %cst_41 = arith.constant 0.000000e+00 : f32
    %174 = vector.broadcast %cst_41 : f32 to vector<8x128xf32>
    %175 = arith.select %173, %171, %174 : vector<8x128xi1>, vector<8x128xf32>
    %176 = vector.extract_strided_slice %53 {offsets = [0, 13], sizes = [8, 1], strides = [1, 1]} : vector<8x15xf32> to vector<8x1xf32>
    %177 = vector.broadcast %176 : vector<8x1xf32> to vector<8x128xf32>
    %178 = arith.mulf %177, %175 : vector<8x128xf32>
    %179 = arith.addf %170, %178 : vector<8x128xf32>
    %c121_i32 = arith.constant 121 : i32
    %180 = tpu.dynamic_rotate %56 by %c121_i32 dim 1 : vector<8x128xf32>, i32 -> vector<8x128xf32>
    %c57_i32 = arith.constant 57 : i32
    %181 = vector.broadcast %c57_i32 : i32 to vector<8x128xi32>
    %182 = arith.cmpi slt, %59, %181 : vector<8x128xi32>
    %cst_42 = arith.constant 0.000000e+00 : f32
    %183 = vector.broadcast %cst_42 : f32 to vector<8x128xf32>
    %184 = arith.select %182, %180, %183 : vector<8x128xi1>, vector<8x128xf32>
    %185 = vector.extract_strided_slice %53 {offsets = [0, 14], sizes = [8, 1], strides = [1, 1]} : vector<8x15xf32> to vector<8x1xf32>
    %186 = vector.broadcast %185 : vector<8x1xf32> to vector<8x128xf32>
    %187 = arith.mulf %186, %184 : vector<8x128xf32>
    %188 = arith.addf %179, %187 : vector<8x128xf32>
    %c0_43 = arith.constant 0 : index
    %c0_44 = arith.constant 0 : index
    %189 = vector.load %arg4[%c0_43, %c0_44] : memref<8x128xf32, #tpu.memory_space<vmem>>, vector<8x128xf32>
    tpu.vector_store %arg4[%c0_43, %c0_44], %188 {strides = array<i32>} : memref<8x128xf32, #tpu.memory_space<vmem>>, vector<8x128xf32>,
    return
  }
  func.func @transform_0(%arg0: i32) -> (i32, i32) {
    %c0_i32 = arith.constant 0 : i32
    %c0_i32_0 = arith.constant 0 : i32
    %c0_i32_1 = arith.constant 0 : i32
    return %c0_i32, %c0_i32_0 : i32, i32
  }
  func.func @transform_1(%arg0: i32) -> (i32, i32) {
    %c0_i32 = arith.constant 0 : i32
    %c0_i32_0 = arith.constant 0 : i32
    %c0_i32_1 = arith.constant 0 : i32
    return %c0_i32, %c0_i32_0 : i32, i32
  }
  func.func @transform_2(%arg0: i32) -> (i32, i32) {
    %c0_i32 = arith.constant 0 : i32
    %c0_i32_0 = arith.constant 0 : i32
    %c0_i32_1 = arith.constant 0 : i32
    return %c0_i32, %c0_i32_0 : i32, i32
  }
  func.func @transform_3(%arg0: i32) -> (i32, i32) {
    %c0_i32 = arith.constant 0 : i32
    %c0_i32_0 = arith.constant 0 : i32
    %c0_i32_1 = arith.constant 0 : i32
    return %c0_i32, %c0_i32_0 : i32, i32
  }
}

</mosaic_0001>

<bundles_post_ra>
// kernel: tpu_custom_call.1
= control target key start
LH: loop header
LB: loop body
LE: loop exit
PB: predicated region body
PF: predicated region fallthrough
CT: control target
= control target key end

     0   :  { %v669_v2 = vmov 0   ;;  %s1010_s0 = inlined_call_operand.vmem [shape: f32[1,128], index: 0, kind: input, shape index: {}]   ;;  %s1011_s1 = inlined_call_operand.vmem [shape: f32[8,2], index: 1, kind: input, shape index: {}]   ;;  %s1012_s2 = inlined_call_operand.vmem [shape: f32[2,15], index: 2, kind: input, shape index: {}]   ;;  %s1013_s3 = inlined_call_operand.hbm [shape: f32[8,128], index: 3, kind: output, shape index: {}]  }
   0x1   :  { %v15_v0 = vld [vmem:[%s1011_s1] sm:$0xff]  ;;  %618 = vset.pattern.permute.xlu1 %v669_v2  ;;  %617 = vset.pattern.permute.xlu0 %v669_v2 }
   0x2   :  { %v18_v1 = vand.u32 2147483647, %v15_v0 }
   0x3   :  { %8 = vsyncpa [#allocation3], 0  ;;  %619 = vset.pattern.permute.xlu2 %v669_v2  ;;  %s670_s14 = smov 127   ;;  %v735_v9 = vld [vmem:[%s1012_s2] ss:$0 sm:$0xff]  ;;  %s678_s18 = smov 6  }
   0x4   :  { %v19_v3 = vadd.f32 0.003125, %v18_v1  ;;  %v671_v22 = vmov 2102212464   ;;  %v672_v24 = vmov 920167782  }
   0x5   :  { %v673_v29 = vmov 1326507024   ;;  %v674_v31 = vmov 683565275   ;;  %v675_v33 = vmov 2475754826  }
   0x6   :  { %21 = vrot.lane.b32.xlu0 %v19_v3, %s670_s14  ;;  %v216_v4 = vmul.f32 16000.0, %v19_v3  ;;  %v395_v6 = vmul.f32 2.0, %v19_v3  ;;  %v676_v36 = vmov 2131351028   ;;  %s679_s19 = smov 5   ;;  %s680_s20 = smov 4  }
   0x7   :  { %s681_s21 = smov 2   ;;  %s682_s22 = smov 1  }
   0x8   :  { %v217_v5 = vmul.f32 6.2831855, %v216_v4  ;;  %398 = vperm.xlu2 %619, %v395_v6   ;;  %s683_s23 = smov 3   ;;  %s684_s24 = smov 125  }
   0x9   :  { %s685_s25 = smov 124   ;;  %s686_s26 = smov 126  }
   0xa   :  { %220 = vperm.xlu1 %618, %v217_v5   ;;  %s687_s27 = smov 123   ;;  %s688_s28 = smov 122  }
   0xb   :  { %s704_s6 = smov [#allocation2]   ;;  %s566_s10 = sshll.u32 %s1013_s3, 4  ;;  %s567_s10 = int_to_ptr.hbm [resolvable:$true] %s566_s10 }
   0xc   :  { %s564_s7 = sshll.u32 %s704_s6, 4  ;;  %s565_s7 = int_to_ptr.vmem [resolvable:$true] %s564_s7 }
  0x78   :  { %v22_v7 = vpop.permute.xlu0 %21 }
  0x79   :  { %v24_v8 = vadd.f32 %v22_v7, %v19_v3 }
  0x7b   :  { %v25_v10 = vmul.f32 16000.0, %v24_v8  ;;  %v209_v11 = vmul.f32 2.0, %v24_v8 }
  0x7c   :  { %v221_v12 = vpop.permute.xlu1 %220 }
  0x7d   :  { %v26_v13 = vmul.f32 6.2831855, %v25_v10  ;;  %212 = vperm.xlu1 %618, %v209_v11   ;;  %v738_v14 = vmul.f32 %v735_v9, %v221_v12 }
  0x7f   :  { %29 = vperm.xlu0 %617, %v26_v13   ;;  %v227_v15 = vand.u32 2139095040, %v738_v14  ;;  %v747_v26 = vand.u32 2147483647, %v738_v14  ;;  %639 = vrcp.f32 %v738_v14 }
  0x81   :  { %v228_v16 = vshrl.u32 %v227_v15, 23  ;;  %v231_v41 = vand.u32 8388607, %v747_v26 }
  0x83   :  { %v578_v17 = vadd.s32 4294967169, %v228_v16  ;;  %v232_v47 = vor.u32 8388608, %v231_v41 }
  0x85   :  { %v234_v18 = vadd.s32 1, %v578_v17  ;;  %v272_v53 = vshll.u32 %v232_v47, 8 }
  0x87   :  { %vm235_vm0 = vcmp.gt.s32.totalorder %v234_v18, 0  ;;  %v273_v56 = vand.u32 65535, %v272_v53  ;;  %v274_v59 = vshrl.u32 %v272_v53, 16 }
  0x88   :  { %v236_v19 = vsel %vm235_vm0, %v234_v18, 0 }
  0x89   :  { %v238_v20 = vand.u32 31, %v236_v19  ;;  %v749_v27 = vshrl.u32 %v236_v19, 5 }
  0x8b   :  { %v741_v21 = vsub.s32 32, %v238_v20  ;;  %v250_v23 = vshll.u32 %v671_v22, %v238_v20  ;;  %v253_v28 = vshll.u32 %v672_v24, %v238_v20  ;;  %v241_v32 = vshll.u32 %v674_v31, %v238_v20 }
  0x8c   :  { %v244_v34 = vshll.u32 %v675_v33, %v238_v20  ;;  %v247_v38 = vshll.u32 %v676_v36, %v238_v20  ;;  %vm259_vm1 = vcmp.lt.s32.totalorder %v749_v27, 4  ;;  %vm256_vm2 = vcmp.lt.s32.totalorder %v749_v27, 1 }
  0x8d   :  { %v251_v25 = vshrl.u32 %v672_v24, %v741_v21  ;;  %v254_v30 = vshrl.u32 %v673_v29, %v741_v21  ;;  %v242_v35 = vshrl.u32 %v675_v33, %v741_v21  ;;  %v245_v37 = vshrl.u32 %v676_v36, %v741_v21 }
  0x8e   :  { %v248_v39 = vshrl.u32 %v671_v22, %v741_v21  ;;  %vm258_vm3 = vcmp.lt.s32.totalorder %v749_v27, 3  ;;  %vm257_vm4 = vcmp.lt.s32.totalorder %v749_v27, 2 }
  0x8f   :  { %v252_v40 = vor.u32 %v251_v25, %v250_v23  ;;  %v255_v42 = vor.u32 %v254_v30, %v253_v28  ;;  %v243_v43 = vor.u32 %v242_v35, %v241_v32  ;;  %v246_v44 = vor.u32 %v245_v37, %v244_v34 }
  0x90   :  { %v249_v45 = vor.u32 %v248_v39, %v247_v38  ;;  %v240_v35 = vshrl.u32 %v674_v31, %v741_v21 }
  0x91   :  { %v265_v46 = vsel %vm259_vm1, %v252_v40, 920167782  ;;  %v269_v48 = vsel %vm259_vm1, %v255_v42, 1326507024  ;;  %v264_v49 = vsel %vm256_vm2, %v243_v43, %v246_v44 }
  0x92   :  { %v266_v50 = vsel %vm258_vm3, %v249_v45, %v265_v46  ;;  %v268_v51 = vsel %vm256_vm2, %v246_v44, %v249_v45  ;;  %v270_v52 = vsel %vm258_vm3, %v252_v40, %v269_v48  ;;  %v261_v39 = vsel %vm259_vm1, %v249_v45, 2102212464 }
  0x93   :  { %v267_v54 = vsel %vm257_vm4, %v264_v49, %v266_v50  ;;  %v271_v55 = vsel %vm257_vm4, %v268_v51, %v270_v52  ;;  %v260_v41 = vsel %vm256_vm2, %v240_v35, %v243_v43  ;;  %v262_v42 = vsel %vm258_vm3, %v246_v44, %v261_v39  ;;  %v851_v39 = vld [vmem:[%s1010_s0] ss:$0 sm:$0xff]  ;;  %s677_s0 = smov 7  }
  0x94   :  { %v298_v57 = vshrl.u32 %v267_v54, 16  ;;  %v276_v58 = vshrl.u32 %v271_v55, 16  ;;  %v297_v60 = vand.u32 65535, %v267_v54  ;;  %v275_v62 = vand.u32 65535, %v271_v55  ;;  %418 = vrot.lane.b32.xlu1 %v851_v39, %s677_s0  ;;  %428 = vrot.lane.b32.xlu0 %v851_v39, %s678_s18 }
  0x95   :  { %v263_v48 = vsel %vm257_vm4, %v260_v41, %v262_v42  ;;  %438 = vrot.lane.b32.xlu2 %v851_v39, %s679_s19 }
  0x96   :  { %v300_v61 = vmul.u32 %v298_v57, %v273_v56  ;;  %v278_v63 = vmul.u32 %v276_v58, %v273_v56  ;;  %v299_v0 = vmul.u32 %v297_v60, %v273_v56  ;;  %v301_v1 = vmul.u32 %v297_v60, %v274_v59 }
  0x97   :  { %v277_v4 = vmul.u32 %v275_v62, %v273_v56  ;;  %v279_v5 = vmul.u32 %v275_v62, %v274_v59  ;;  %v302_v12 = vmul.u32 %v298_v57, %v274_v59  ;;  %v280_v13 = vmul.u32 %v276_v58, %v274_v59 }
  0x98   :  { %v303_v3 = vshll.u32 %v300_v61, 16  ;;  %v281_v6 = vshll.u32 %v278_v63, 16  ;;  %v305_v7 = vshll.u32 %v301_v1, 16  ;;  %v304_v23 = vshrl.u32 %v300_v61, 16 }
  0x99   :  { %v283_v10 = vshll.u32 %v279_v5, 16  ;;  %v282_v28 = vshrl.u32 %v278_v63, 16  ;;  %v306_v32 = vshrl.u32 %v301_v1, 16  ;;  %v284_v37 = vshrl.u32 %v279_v5, 16 }
  0x9a   :  { %vm307_vm5 = vc.u32 %v299_v0, %v303_v3  ;;  %v309_v8 = vadd.s32 %v303_v3, %v299_v0  ;;  %vm285_vm6 = vc.u32 %v277_v4, %v281_v6  ;;  %v287_v11 = vadd.s32 %v281_v6, %v277_v4 }
  0x9b   :  { %v308_v15 = vsel %vm307_vm5, 1, %v669_v2  ;;  %v286_v16 = vsel %vm285_vm6, 1, %v669_v2  ;;  %v317_v21 = vmul.u32 %v272_v53, %v263_v48  ;;  %vm226_vm6 = vcmp.lt.s32.totalorder %v738_v14, 0 }
  0x9c   :  { %vm311_vm7 = vc.u32 %v309_v8, %v305_v7  ;;  %vm289_vm8 = vc.u32 %v287_v11, %v283_v10  ;;  %v310_v17 = vadd.s32 %v308_v15, %v302_v12  ;;  %v288_v18 = vadd.s32 %v286_v16, %v280_v13  ;;  %448 = vrot.lane.b32.xlu1 %v851_v39, %s680_s20 }
  0x9d   :  { %v312_v19 = vsel %vm311_vm7, 1, %v669_v2  ;;  %v290_v20 = vsel %vm289_vm8, 1, %v669_v2  ;;  %v313_v47 = vadd.s32 %v309_v8, %v305_v7  ;;  %468 = vrot.lane.b32.xlu0 %v851_v39, %s681_s21  ;;  %478 = vrot.lane.b32.xlu2 %v851_v39, %s682_s22  ;;  %vm225_vm7 = vcmp.le.f32.partialorder %v747_v26, 0.7853982 }
  0x9e   :  { %v314_v25 = vadd.s32 %v312_v19, %v310_v17  ;;  %v292_v30 = vadd.s32 %v290_v20, %v288_v18 }
  0xa0   :  { %v315_v34 = vadd.s32 %v314_v25, %v304_v23  ;;  %v293_v38 = vadd.s32 %v292_v30, %v282_v28 }
  0xa2   :  { %v316_v40 = vadd.s32 %v315_v34, %v306_v32  ;;  %v294_v46 = vadd.s32 %v293_v38, %v284_v37 }
  0xa4   :  { %v320_v49 = vadd.s32 1, %v316_v40  ;;  %vm319_vm9 = vc.u32 %v294_v46, %v313_v47  ;;  %v318_v0 = vadd.s32 %v313_v47, %v294_v46  ;;  %458 = vrot.lane.b32.xlu1 %v851_v39, %s683_s23 }
  0xa5   :  { %508 = vrot.lane.b32.xlu0 %v851_v39, %s684_s24  ;;  %518 = vrot.lane.b32.xlu2 %v851_v39, %s685_s25 }
  0xa6   :  { %v321_v50 = vsel %vm319_vm9, %v320_v49, %v316_v40 }
  0xa7   :  { %v322_v51 = vadd.s32 %v321_v50, %v317_v21 }
  0xa9   :  { %v323_v52 = vadd.s32 536870912, %v322_v51 }
  0xab   :  { %v798_v54 = vshrl.u32 %v323_v52, 30 }
  0xac   :  { %488 = vrot.lane.b32.xlu1 %v851_v39, %s670_s14 }
  0xad   :  { %v325_v45 = vshll.u32 %v798_v54, 30 }
  0xaf   :  { %v326_v55 = vsub.s32 %v322_v51, %v325_v45 }
  0xb1   :  { %v328_v43 = vsub.s32 0, %v326_v55  ;;  %vm327_vm10 = vcmp.lt.s32.totalorder %v326_v55, 0 }
  0xb3   :  { %v329_v56 = vsel %vm327_vm10, %v328_v43, %v326_v55 }
  0xb4   :  { %v330_v44 = vclz %v329_v56  ;;  %498 = vrot.lane.b32.xlu1 %v851_v39, %s686_s26 }
  0xb6   :  { %v579_v27 = vadd.s32 4294967294, %v330_v44 }
  0xb8   :  { %vm580_vm11 = vcmp.lt.s32.totalorder %v579_v27, 0 }
  0xb9   :  { %v333_v62 = vsel %vm580_vm11, 0, %v579_v27 }
  0xba   :  { %v334_v1 = vsub.s32 32, %v333_v62  ;;  %v338_v3 = vsub.s32 4294967266, %v333_v62  ;;  %v335_v7 = vshll.u32 %v326_v55, %v333_v62 }
  0xbc   :  { %v336_v8 = vshrl.u32 %v318_v0, %v334_v1  ;;  %v339_v10 = vadd.s32 127, %v338_v3  ;;  %528 = vrot.lane.b32.xlu1 %v851_v39, %s687_s27 }
  0xbe   :  { %v340_v34 = vshll.u32 %v339_v10, 23  ;;  %v337_v42 = vor.u32 %v336_v8, %v335_v7 }
  0xc0   :  { %v341_v45 = vor.u32 4788187, %v340_v34 }
  0xc4   :  { %538 = vrot.lane.b32.xlu1 %v851_v39, %s688_s28 }
  0xf1   :  { %v30_v57 = vpop.permute.xlu0 %29 }
  0xf2   :  { %v802_v58 = vmul.f32 %v735_v9, %v30_v57 }
  0xf4   :  { %v38_v59 = vand.u32 2139095040, %v802_v58  ;;  %v806_v61 = vand.u32 2147483647, %v802_v58  ;;  %641 = vrcp.f32 %v802_v58  ;;  %vm37_vm10 = vcmp.lt.s32.totalorder %v802_v58, 0 }
  0xf6   :  { %v39_v53 = vshrl.u32 %v38_v59, 23  ;;  %v42_v4 = vand.u32 8388607, %v806_v61  ;;  %v344_v59 = vcvt.s32.f32 %v337_v42  ;;  %vm36_vm11 = vcmp.le.f32.partialorder %v806_v61, 0.7853982 }
  0xf8   :  { %v575_v60 = vadd.s32 4294967169, %v39_v53  ;;  %v43_v11 = vor.u32 8388608, %v42_v4 }
  0xfa   :  { %v45_v63 = vadd.s32 1, %v575_v60  ;;  %v833_v37 = vshll.u32 %v43_v11, 8 }
  0xfc   :  { %vm46_vm12 = vcmp.gt.s32.totalorder %v45_v63, 0  ;;  %v84_v48 = vand.u32 65535, %v833_v37  ;;  %v85_v49 = vshrl.u32 %v833_v37, 16 }
  0xfd   :  { %v47_v5 = vsel %vm46_vm12, %v45_v63, 0  ;;  %v342_v63 = vand.u32 2147483647, %v341_v45 }
  0xfe   :  { %v49_v9 = vand.u32 31, %v47_v5  ;;  %v811_v12 = vshrl.u32 %v47_v5, 5 }
 0x100   :  { %v809_v6 = vsub.s32 32, %v49_v9  ;;  %v52_v13 = vshll.u32 %v674_v31, %v49_v9  ;;  %v55_v15 = vshll.u32 %v675_v33, %v49_v9  ;;  %v58_v18 = vshll.u32 %v676_v36, %v49_v9 }
 0x101   :  { %v61_v20 = vshll.u32 %v671_v22, %v49_v9  ;;  %v64_v25 = vshll.u32 %v672_v24, %v49_v9  ;;  %vm67_vm13 = vcmp.lt.s32.totalorder %v811_v12, 1  ;;  %vm69_vm14 = vcmp.lt.s32.totalorder %v811_v12, 3 }
 0x102   :  { %v53_v16 = vshrl.u32 %v675_v33, %v809_v6  ;;  %v56_v17 = vshrl.u32 %v676_v36, %v809_v6  ;;  %v59_v19 = vshrl.u32 %v671_v22, %v809_v6  ;;  %v62_v23 = vshrl.u32 %v672_v24, %v809_v6 }
 0x103   :  { %v65_v28 = vshrl.u32 %v673_v29, %v809_v6  ;;  %vm70_vm15 = vcmp.lt.s32.totalorder %v811_v12, 4  ;;  %vm68_vm0 = vcmp.lt.s32.totalorder %v811_v12, 2 }
 0x104   :  { %v828_v30 = vor.u32 %v53_v16, %v52_v13  ;;  %v830_v33 = vor.u32 %v56_v17, %v55_v15  ;;  %v60_v32 = vor.u32 %v59_v19, %v58_v18  ;;  %v63_v36 = vor.u32 %v62_v23, %v61_v20 }
 0x105   :  { %v66_v35 = vor.u32 %v65_v28, %v64_v25  ;;  %v51_v15 = vshrl.u32 %v674_v31, %v809_v6  ;;  %v345_v23 = vmul.f32 %v344_v59, %v342_v63  ;;  %v348_v63 = vsub.s32 4, %v798_v54 }
 0x106   :  { %v75_v22 = vsel %vm67_vm13, %v828_v30, %v830_v33  ;;  %v79_v24 = vsel %vm67_vm13, %v830_v33, %v60_v32  ;;  %v76_v29 = vsel %vm70_vm15, %v63_v36, 920167782  ;;  %v72_v10 = vsel %vm70_vm15, %v60_v32, 2102212464 }
 0x107   :  { %v80_v38 = vsel %vm70_vm15, %v66_v35, 1326507024  ;;  %v77_v40 = vsel %vm69_vm14, %v60_v32, %v76_v29  ;;  %v71_v25 = vsel %vm67_vm13, %v51_v15, %v828_v30  ;;  %v73_v28 = vsel %vm69_vm14, %v830_v33, %v72_v10 }
 0x108   :  { %v81_v41 = vsel %vm69_vm14, %v63_v36, %v80_v38  ;;  %v78_v46 = vsel %vm68_vm0, %v75_v22, %v77_v40  ;;  %v74_v22 = vsel %vm68_vm0, %v71_v25, %v73_v28  ;;  %v346_v30 = vxor.u32 2147483648, %v345_v23 }
 0x109   :  { %v82_v47 = vsel %vm68_vm0, %v79_v24, %v81_v41  ;;  %v108_v51 = vand.u32 65535, %v78_v46  ;;  %v109_v52 = vshrl.u32 %v78_v46, 16  ;;  %v128_v29 = vmul.u32 %v833_v37, %v74_v22 }
 0x10a   :  { %v86_v21 = vand.u32 65535, %v82_v47  ;;  %v87_v50 = vshrl.u32 %v82_v47, 16  ;;  %v347_v40 = vsel %vm226_vm6, %v346_v30, %v345_v23  ;;  %v689_v23 = vmov 2  }
 0x10b   :  { %v111_v56 = vmul.u32 %v109_v52, %v84_v48  ;;  %v112_v44 = vmul.u32 %v108_v51, %v85_v49  ;;  %v110_v60 = vmul.u32 %v108_v51, %v84_v48  ;;  %v113_v3 = vmul.u32 %v109_v52, %v85_v49  ;;  %623 = vset.pattern.permute.xlu0 %v689_v23 }
 0x10c   :  { %v89_v55 = vmul.u32 %v87_v50, %v84_v48  ;;  %v90_v43 = vmul.u32 %v86_v21, %v85_v49  ;;  %v88_v57 = vmul.u32 %v86_v21, %v84_v48  ;;  %v91_v53 = vmul.u32 %v87_v50, %v85_v49 }
 0x10d   :  { %v114_v62 = vshll.u32 %v111_v56, 16  ;;  %v116_v5 = vshll.u32 %v112_v44, 16  ;;  %v115_v19 = vshrl.u32 %v111_v56, 16  ;;  %v117_v36 = vshrl.u32 %v112_v44, 16 }
 0x10e   :  { %v92_v27 = vshll.u32 %v89_v55, 16  ;;  %v94_v0 = vshll.u32 %v90_v43, 16  ;;  %v93_v16 = vshrl.u32 %v89_v55, 16  ;;  %v95_v32 = vshrl.u32 %v90_v43, 16 }
 0x10f   :  { %vm118_vm2 = vc.u32 %v110_v60, %v114_v62  ;;  %v120_v9 = vadd.s32 %v114_v62, %v110_v60  ;;  %v897_v42 = vsel %vm225_vm7, %v738_v14, %v347_v40  ;;  %v690_v25 = vmov 7  }
 0x110   :  { %vm96_vm1 = vc.u32 %v88_v57, %v92_v27  ;;  %v98_v1 = vadd.s32 %v92_v27, %v88_v57  ;;  %v119_v8 = vsel %vm118_vm2, 1, %v669_v2  ;;  %v352_v47 = vmul.f32 %v897_v42, %v897_v42  ;;  %620 = vset.pattern.permute.xlu2 %v690_v25  ;;  %v399_v25 = vpop.permute.xlu2 %398 }
 0x111   :  { %v97_v4 = vsel %vm96_vm1, 1, %v669_v2  ;;  %v121_v13 = vadd.s32 %v119_v8, %v113_v3  ;;  %vm122_vm4 = vc.u32 %v120_v9, %v116_v5  ;;  %v124_v6 = vadd.s32 %v120_v9, %v116_v5  ;;  %v910_v9 = vpop.eup %639 }
 0x112   :  { %v99_v7 = vadd.s32 %v97_v4, %v91_v53  ;;  %vm100_vm3 = vc.u32 %v98_v1, %v94_v0  ;;  %v123_v18 = vsel %vm122_vm4, 1, %v669_v2  ;;  %v360_v21 = vmul.f32 -0.00019511016, %v352_v47  ;;  %v922_v28 = vpop.eup %641 }
 0x113   :  { %v101_v11 = vsel %vm100_vm3, 1, %v669_v2  ;;  %v125_v20 = vadd.s32 %v123_v18, %v121_v13  ;;  %v353_v52 = vmul.f32 -0.001358992, %v352_v47  ;;  %vm367_vm13 = vweird.f32 %v738_v14 }
 0x114   :  { %v103_v17 = vadd.s32 %v101_v11, %v99_v7  ;;  %v361_v45 = vadd.f32 0.008332121, %v360_v21  ;;  %v349_v7 = vsel %vm226_vm6, %v348_v63, %v798_v54  ;;  %vm385_vm14 = vweird.f32 %v910_v9 }
 0x115   :  { %v126_v35 = vadd.s32 %v125_v20, %v115_v19  ;;  %v354_v56 = vadd.f32 0.041655596, %v353_v52  ;;  %v390_v21 = vand.u32 2147483648, %v738_v14  ;;  %vm949_vm2 = vmor %vm367_vm13, %vm385_vm14  ;;  %vm389_vm3 = vcmp.eq.f32.partialorder %v747_v26, 8.507059e+37 }
 0x116   :  { %v104_v34 = vadd.s32 %v103_v17, %v93_v16  ;;  %v362_v44 = vmul.f32 %v361_v45, %v352_v47  ;;  %v351_v16 = vsel %vm225_vm7, 0, %v349_v7  ;;  %v380_v17 = vmul.f32 %v910_v9, %v738_v14 }
 0x117   :  { %v127_v24 = vadd.s32 %v126_v35, %v117_v36  ;;  %v355_v0 = vmul.f32 %v354_v56, %v352_v47  ;;  %v368_v54 = vadd.s32 3, %v351_v16  ;;  %v691_v36 = vmov 1  }
 0x118   :  { %v105_v31 = vadd.s32 %v104_v34, %v95_v32  ;;  %v363_v1 = vadd.f32 -0.16666654, %v362_v44  ;;  %v381_v34 = vsub.f32 1.0, %v380_v17  ;;  %622 = vset.pattern.permute.xlu1 %v691_v36  ;;  %vm196_vm4 = vweird.f32 %v922_v28 }
 0x119   :  { %v131_v33 = vadd.s32 1, %v127_v24  ;;  %v356_v8 = vadd.f32 -0.4999988, %v355_v0 }
 0x11a   :  { %vm130_vm5 = vc.u32 %v105_v31, %v124_v6  ;;  %v129_v57 = vadd.s32 %v124_v6, %v105_v31  ;;  %v364_v10 = vmul.f32 %v363_v1, %v352_v47  ;;  %v16_v6 = vld [vmem:[%s1012_s2] sm:$0x1]  ;;  %v382_v40 = vmul.f32 %v910_v9, %v381_v34  ;;  %v213_v34 = vpop.permute.xlu1 %212 }
 0x11b   :  { %v132_v38 = vsel %vm130_vm5, %v131_v33, %v127_v24  ;;  %v357_v18 = vmul.f32 %v356_v8, %v352_v47  ;;  %v191_v33 = vmul.f32 %v922_v28, %v802_v58  ;;  %vm34_vm12 = vcmp.eq.f32.partialorder %v16_v6, 0.0 }
 0x11c   :  { %v133_v12 = vadd.s32 %v132_v38, %v128_v29  ;;  %v365_v19 = vadd.f32 1.0, %v364_v10  ;;  %v369_v29 = vand.u32 3, %v368_v54  ;;  %vm178_vm5 = vweird.f32 %v802_v58 }
 0x11d   :  { %v358_v24 = vadd.f32 1.0, %v357_v18  ;;  %vm197_vm6 = vmor %vm178_vm5, %vm196_vm4 }
 0x11e   :  { %v134_v41 = vadd.s32 536870912, %v133_v12  ;;  %v366_v30 = vmul.f32 %v365_v19, %v897_v42  ;;  %vm371_vm15 = vcmp.eq.s32.totalorder %v369_v29, 0  ;;  %vm374_vm0 = vcmp.eq.s32.totalorder %v369_v29, 2 }
 0x11f   :  { %vm370_vm1 = vcmp.lt.s32.totalorder %v369_v29, 2  ;;  %v696_v29 = vmov 3  }
 0x120   :  { %v901_v46 = vshrl.u32 %v134_v41, 30  ;;  %v372_v42 = vxor.u32 2147483648, %v366_v30 }
 0x122   :  { %v136_v37 = vshll.u32 %v901_v46, 30  ;;  %v159_v35 = vsub.s32 4, %v901_v46  ;;  %v373_v56 = vsel %vm371_vm15, %v358_v24, %v372_v42  ;;  %v439_v42 = vpop.permute.xlu2 %438 }
 0x124   :  { %v137_v48 = vsub.s32 %v133_v12, %v136_v37  ;;  %v160_v41 = vsel %vm37_vm10, %v159_v35, %v901_v46  ;;  %v383_v46 = vadd.f32 %v910_v9, %v382_v40  ;;  %v419_v40 = vpop.permute.xlu1 %418 }
 0x126   :  { %vm138_vm8 = vcmp.lt.s32.totalorder %v137_v48, 0  ;;  %v139_v49 = vsub.s32 0, %v137_v48  ;;  %v387_v63 = vsel %vm949_vm2, %v910_v9, %v383_v46  ;;  %v429_v46 = vpop.permute.xlu0 %428 }
 0x128   :  { %v140_v50 = vsel %vm138_vm8, %v139_v49, %v137_v48  ;;  %v192_v49 = vsub.f32 1.0, %v191_v33  ;;  %v695_v33 = vmov 10  }
 0x129   :  { %v141_v51 = vclz %v140_v50  ;;  %v162_v50 = vsel %vm36_vm11, 0, %v160_v41  ;;  %v701_v41 = vmov 9  }
 0x12b   :  { %v576_v55 = vadd.s32 4294967294, %v141_v51 }
 0x12d   :  { %vm577_vm9 = vcmp.lt.s32.totalorder %v576_v55, 0 }
 0x12e   :  { %v144_v43 = vsel %vm577_vm9, 0, %v576_v55 }
 0x12f   :  { %v145_v27 = vsub.s32 32, %v144_v43  ;;  %v149_v59 = vsub.s32 4294967266, %v144_v43  ;;  %v146_v53 = vshll.u32 %v137_v48, %v144_v43  ;;  %v375_v48 = vxor.u32 2147483648, %v358_v24 }
 0x130   :  { %v693_v24 = vmov 5  }
 0x131   :  { %v147_v60 = vshrl.u32 %v129_v57, %v145_v27  ;;  %v150_v62 = vadd.s32 127, %v149_v59  ;;  %v376_v44 = vsel %vm374_vm0, %v375_v48, %v366_v30  ;;  %v179_v57 = vadd.s32 3, %v162_v50 }
 0x132   :  { %v193_v27 = vmul.f32 %v922_v28, %v192_v49  ;;  %v205_v59 = vsel %vm34_vm12, 1, %v669_v2  ;;  %v377_v0 = vsel %vm370_vm1, %v373_v56, %v376_v44  ;;  %v694_v30 = vmov 11  }
 0x133   :  { %v148_v3 = vor.u32 %v147_v60, %v146_v53  ;;  %v151_v4 = vshll.u32 %v150_v62, 23  ;;  %v391_v53 = vor.u32 1.1754944e-38, %v390_v21  ;;  %v703_v48 = vmov 13   ;;  %v479_v21 = vpop.permute.xlu2 %478 }
 0x134   :  { %v194_v7 = vadd.f32 %v922_v28, %v193_v27  ;;  %v409_v56 = vlaneseq }
 0x135   :  { %v152_v5 = vor.u32 4788187, %v151_v4  ;;  %v155_v13 = vcvt.s32.f32 %v148_v3  ;;  %v206_v4 = vperm.slane %v205_v59, 0  ;;  %v392_v8 = vsel %vm389_vm3, %v391_v53, %v387_v63 }
 0x136   :  { %v198_v16 = vsel %vm197_vm6, %v922_v28, %v194_v7  ;;  %v637_v28 = vld [vmem:[%s1012_s2 + $0x1] ss:$0 sm:$0xff]  ;;  %s697_s2 = smov 121  }
 0x137   :  { %v153_v11 = vand.u32 2147483647, %v152_v5  ;;  %v180_v5 = vand.u32 3, %v179_v57  ;;  %vm966_vm7 = vcmp.eq.s32.totalorder %v206_v4, 1  ;;  %v410_v57 = vand.u32 127, %v409_v56 }
 0x139   :  { %v156_v15 = vmul.f32 %v155_v13, %v153_v11  ;;  %v201_v13 = vand.u32 2147483648, %v802_v58  ;;  %vm182_vm8 = vcmp.eq.s32.totalorder %v180_v5, 0  ;;  %vm185_vm9 = vcmp.eq.s32.totalorder %v180_v5, 2 }
 0x13a   :  { %v987_v59 = vand.u32 63, %v410_v57 }
 0x13b   :  { %v157_v20 = vxor.u32 2147483648, %v156_v15 }
 0x13c   :  { %vm420_vm12 = vcmp.ge.s32.totalorder %v987_v59, 7  ;;  %vm440_vm14 = vcmp.ge.s32.totalorder %v987_v59, 5  ;;  %vm450_vm15 = vcmp.ge.s32.totalorder %v987_v59, 4  ;;  %vm460_vm0 = vcmp.ge.s32.totalorder %v987_v59, 3 }
 0x13d   :  { %v158_v32 = vsel %vm37_vm10, %v157_v20, %v156_v15  ;;  %v378_v15 = vsel %vm367_vm13, nan, %v377_v0  ;;  %vm181_vm10 = vcmp.lt.s32.totalorder %v180_v5, 2  ;;  %v202_v20 = vor.u32 1.1754944e-38, %v201_v13 }
 0x13e   :  { %v161_v31 = vsel %vm36_vm11, %v802_v58, %v158_v32  ;;  %v393_v17 = vmul.f32 %v392_v8, %v378_v15  ;;  %vm200_vm11 = vcmp.eq.f32.partialorder %v806_v61, 8.507059e+37  ;;  %v692_v61 = vmov 6  }
 0x13f   :  { %v163_v22 = vmul.f32 %v161_v31, %v161_v31  ;;  %v203_v58 = vsel %vm200_vm11, %v202_v20, %v198_v16  ;;  %vm430_vm13 = vcmp.ge.s32.totalorder %v987_v59, 6  ;;  %vm470_vm1 = vcmp.ge.s32.totalorder %v987_v59, 2 }
 0x140   :  { %v394_v32 = vsel %vm966_vm7, 1.0, %v393_v17  ;;  %vm480_vm2 = vcmp.ge.s32.totalorder %v987_v59, 1  ;;  %vm490_vm3 = vcmp.lt.s32.totalorder %v987_v59, 63  ;;  %vm500_vm4 = vcmp.lt.s32.totalorder %v987_v59, 62 }
 0x141   :  { %v164_v38 = vmul.f32 -0.001358992, %v163_v22  ;;  %v171_v12 = vmul.f32 -0.00019511016, %v163_v22  ;;  %vm520_vm6 = vcmp.lt.s32.totalorder %v987_v59, 60 }
 0x143   :  { %v165_v37 = vadd.f32 0.041655596, %v164_v38  ;;  %v172_v47 = vadd.f32 0.008332121, %v171_v12  ;;  %v698_v38 = vmov 14   ;;  %v699_v12 = vmov 4  }
 0x145   :  { %v166_v51 = vmul.f32 %v165_v37, %v163_v22  ;;  %v173_v52 = vmul.f32 %v172_v47, %v163_v22  ;;  %v449_v37 = vpop.permute.xlu1 %448  ;;  %v702_v47 = vmov 12  }
 0x147   :  { %v167_v55 = vadd.f32 -0.4999988, %v166_v51  ;;  %v174_v43 = vadd.f32 -0.16666654, %v173_v52  ;;  %v981_v51 = vpop.permute.xlu2 %518 }
 0x149   :  { %v168_v60 = vmul.f32 %v167_v55, %v163_v22  ;;  %v175_v62 = vmul.f32 %v174_v43, %v163_v22  ;;  %v469_v43 = vpop.permute.xlu0 %468 }
 0x14a   :  { %v471_v20 = vsel %vm470_vm1, %v469_v43, 0.0 }
 0x14b   :  { %v169_v1 = vadd.f32 1.0, %v168_v60  ;;  %v176_v3 = vadd.f32 1.0, %v175_v62  ;;  %v421_v62 = vsel %vm420_vm12, %v419_v40, 0.0 }
 0x14d   :  { %v177_v10 = vmul.f32 %v176_v3, %v161_v31  ;;  %v186_v11 = vxor.u32 2147483648, %v169_v1  ;;  %v401_v31 = vmul.f32 %v399_v25, %v394_v32  ;;  %v459_v49 = vpop.permute.xlu1 %458  ;;  %v481_v25 = vsel %vm480_vm2, %v479_v21, 0.0 }
 0x14e   :  { %v461_v17 = vsel %vm460_vm0, %v459_v49, 0.0 }
 0x14f   :  { %v183_v26 = vxor.u32 2147483648, %v177_v10  ;;  %v187_v19 = vsel %vm185_vm9, %v186_v11, %v177_v10  ;;  %v441_v11 = vsel %vm440_vm14, %v439_v42, 0.0  ;;  %vm550_vm9 = vcmp.lt.s32.totalorder %v987_v59, 57 }
 0x151   :  { %v184_v18 = vsel %vm182_vm8, %v169_v1, %v183_v26  ;;  %v509_v53 = vpop.permute.xlu0 %508  ;;  %v431_v1 = vsel %vm430_vm13, %v429_v46, 0.0  ;;  %v451_v26 = vsel %vm450_vm15, %v449_v37, 0.0  ;;  %vm540_vm8 = vcmp.lt.s32.totalorder %v987_v59, 58 }
 0x152   :  { %v188_v54 = vsel %vm181_vm10, %v184_v18, %v187_v19 }
 0x153   :  { %v189_v14 = vsel %vm178_vm5, nan, %v188_v54  ;;  %vm510_vm5 = vcmp.lt.s32.totalorder %v987_v59, 61 }
 0x154   :  { %v204_v23 = vmul.f32 %v203_v58, %v189_v14 }
 0x155   :  { %v489_v50 = vpop.permute.xlu1 %488 }
 0x156   :  { %v208_v36 = vsel %vm966_vm7, 1.0, %v204_v23  ;;  %vm530_vm7 = vcmp.lt.s32.totalorder %v987_v59, 59 }
 0x157   :  { %v215_v35 = vmul.f32 %v213_v34, %v208_v36  ;;  %v491_v36 = vsel %vm490_vm3, %v489_v50, 0.0 }
 0x159   :  { %v402_v6 = vsub.f32 %v215_v35, %v401_v31 }
 0x15b   :  { %v404_v22 = vmul.f32 %v637_v28, %v402_v6 }
 0x15d   :  { %443 = vperm.xlu0 %623, %v404_v22   ;;  %433 = vperm.xlu1 %622, %v404_v22   ;;  %v499_v52 = vpop.permute.xlu1 %498 }
 0x15e   :  { %414 = vperm.xlu2 %620, %v404_v22   ;;  %v501_v31 = vsel %vm500_vm4, %v499_v52, 0.0 }
 0x165   :  { %627 = vset.pattern.permute.xlu0 %v692_v61  ;;  %626 = vset.pattern.permute.xlu1 %v693_v24  ;;  %v983_v55 = vpop.permute.xlu1 %528 }
 0x166   :  { %621 = vset.pattern.permute.xlu2 %v669_v2  ;;  %483 = vperm.xlu0 %627, %v404_v22   ;;  %v700_v2 = vmov 8   ;;  %v531_v40 = vsel %vm530_vm7, %v983_v55, 0.0 }
 0x167   :  { %473 = vperm.xlu1 %626, %v404_v22   ;;  %423 = vperm.xlu2 %621, %v404_v22  }
 0x16d   :  { %v985_v27 = vpop.permute.xlu1 %538 }
 0x16e   :  { %631 = vset.pattern.permute.xlu0 %v694_v30 }
 0x16f   :  { %630 = vset.pattern.permute.xlu1 %v695_v33  ;;  %624 = vset.pattern.permute.xlu2 %v696_v29  ;;  %v511_v29 = vsel %vm510_vm5, %v509_v53, 0.0 }
 0x170   :  { %523 = vperm.xlu0 %631, %v404_v22   ;;  %513 = vperm.xlu1 %630, %v404_v22  }
 0x171   :  { %453 = vperm.xlu2 %624, %v404_v22  }
 0x178   :  { %548 = vrot.lane.b32.xlu0 %v851_v39, %s697_s2  ;;  %634 = vset.pattern.permute.xlu1 %v698_v38 }
 0x179   :  { %625 = vset.pattern.permute.xlu2 %v699_v12  ;;  %553 = vperm.xlu1 %634, %v404_v22  }
 0x17a   :  { %463 = vperm.xlu2 %625, %v404_v22   ;;  %635 = vset.pattern.permute.xlu0 %v698_v38 }
 0x182   :  { %628 = vset.pattern.permute.xlu2 %v700_v2  ;;  %v521_v2 = vsel %vm520_vm6, %v981_v51, 0.0 }
 0x183   :  { %493 = vperm.xlu2 %628, %v404_v22  }
 0x18b   :  { %629 = vset.pattern.permute.xlu2 %v701_v41 }
 0x18c   :  { %503 = vperm.xlu2 %629, %v404_v22  }
 0x194   :  { %632 = vset.pattern.permute.xlu2 %v702_v47 }
 0x195   :  { %533 = vperm.xlu2 %632, %v404_v22  }
 0x19d   :  { %633 = vset.pattern.permute.xlu2 %v703_v48  ;;  %v541_v48 = vsel %vm540_vm8, %v985_v27, 0.0 }
 0x19e   :  { %543 = vperm.xlu2 %633, %v404_v22  }
 0x1b8   :  { %v415_v45 = vpop.permute.xlu2 %414 }
 0x1b9   :  { %v417_v3 = vmul.f32 %v851_v39, %v415_v45 }
 0x1c1   :  { %v424_v44 = vpop.permute.xlu2 %423 }
 0x1c2   :  { %v426_v63 = vmul.f32 %v424_v44, %v421_v62 }
 0x1c4   :  { %v427_v5 = vadd.f32 %v426_v63, %v417_v3 }
 0x1cb   :  { %v454_v60 = vpop.permute.xlu2 %453 }
 0x1cc   :  { %v456_v9 = vmul.f32 %v454_v60, %v451_v26 }
 0x1cf   :  { %v434_v0 = vpop.permute.xlu1 %433  ;;  %v444_v7 = vpop.permute.xlu0 %443 }
 0x1d0   :  { %v436_v4 = vmul.f32 %v434_v0, %v431_v1  ;;  %v446_v13 = vmul.f32 %v444_v7, %v441_v11 }
 0x1d2   :  { %v437_v10 = vadd.f32 %v436_v4, %v427_v5 }
 0x1d4   :  { %v464_v8 = vpop.permute.xlu2 %463  ;;  %v447_v15 = vadd.f32 %v446_v13, %v437_v10 }
 0x1d5   :  { %v466_v19 = vmul.f32 %v464_v8, %v461_v17 }
 0x1d6   :  { %v457_v16 = vadd.f32 %v456_v9, %v447_v15 }
 0x1d8   :  { %v467_v54 = vadd.f32 %v466_v19, %v457_v16  ;;  %v484_v14 = vpop.permute.xlu0 %483 }
 0x1d9   :  { %v474_v18 = vpop.permute.xlu1 %473  ;;  %v486_v34 = vmul.f32 %v484_v14, %v481_v25 }
 0x1da   :  { %v476_v58 = vmul.f32 %v474_v18, %v471_v20 }
 0x1dc   :  { %v477_v23 = vadd.f32 %v476_v58, %v467_v54 }
 0x1dd   :  { %v494_v39 = vpop.permute.xlu2 %493 }
 0x1de   :  { %v487_v28 = vadd.f32 %v486_v34, %v477_v23  ;;  %v496_v35 = vmul.f32 %v494_v39, %v491_v36 }
 0x1e0   :  { %v497_v61 = vadd.f32 %v496_v35, %v487_v28 }
 0x1e2   :  { %v524_v6 = vpop.permute.xlu0 %523  ;;  %v514_v24 = vpop.permute.xlu1 %513 }
 0x1e3   :  { %v516_v38 = vmul.f32 %v514_v24, %v511_v29  ;;  %v526_v41 = vmul.f32 %v524_v6, %v521_v2 }
 0x1e6   :  { %v504_v32 = vpop.permute.xlu2 %503 }
 0x1e7   :  { %v506_v22 = vmul.f32 %v504_v32, %v501_v31 }
 0x1e9   :  { %v507_v30 = vadd.f32 %v506_v22, %v497_v61 }
 0x1ea   :  { %v549_v37 = vpop.permute.xlu0 %548 }
 0x1eb   :  { %v517_v12 = vadd.f32 %v516_v38, %v507_v30  ;;  %v551_v49 = vsel %vm550_vm9, %v549_v37, 0.0  ;;  %v554_v21 = vpop.permute.xlu1 %553 }
 0x1ec   :  { %v556_v51 = vmul.f32 %v554_v21, %v551_v49 }
 0x1ed   :  { %v527_v42 = vadd.f32 %v526_v41, %v517_v12 }
 0x1ef   :  { %v534_v33 = vpop.permute.xlu2 %533 }
 0x1f0   :  { %v536_v47 = vmul.f32 %v534_v33, %v531_v40 }
 0x1f2   :  { %v537_v52 = vadd.f32 %v536_v47, %v527_v42 }
 0x1f8   :  { %v544_v50 = vpop.permute.xlu2 %543 }
 0x1f9   :  { %v546_v46 = vmul.f32 %v544_v50, %v541_v48 }
 0x1fb   :  { %v547_v45 = vadd.f32 %v546_v46, %v537_v52 }
 0x1fd   :  { %v557_v55 = vadd.f32 %v556_v51, %v547_v45 }
 0x1ff   :  { %558 = vst [vmem:[#allocation2] sm:$0xff] %v557_v55 }
 0x200   :  { %569 = dma.vmem_to_hbm [thread:$0]  %s565_s7, 128, %s567_s10, [#allocation3]  }
 0x201   :  { %667 = dma.done.wait [#allocation3], 128  }
 0x202   :  { %668 = vsyncadd [#allocation3], 4294967168 }
 0x203   :  { %574 = vsyncpa [#allocation3], 1 }

</bundles_post_ra>
